<compile_context>
chip_gen: v6e
topology: v6e:2x2x1
jax: 0.10.0
libtpu: 0.0.40
codegen_flags: <defaults>
</compile_context>

<pallas_src>
import jax
import jax.numpy as jnp
from jax.experimental import pallas as pl
from jax.experimental.pallas import tpu as pltpu


def _round_up(x, m):
    return ((x + m - 1) // m) * m


# ----------------------------------------------------------------------------
# Pallas kernel: per-row squared-error sums (unweighted)
#   out[r, :] = sum_d (pred[r, d] - target[r, d])^2   (broadcast across lanes)
# ----------------------------------------------------------------------------
def _l2_rowsum_kernel(pred_ref, targ_ref, out_ref):
    diff = pred_ref[...].astype(jnp.float32) - targ_ref[...].astype(jnp.float32)
    rs = jnp.sum(diff * diff, axis=-1, keepdims=True)       # (tn, 1) f32 accumulate
    out_ref[...] = jnp.broadcast_to(rs, out_ref.shape)      # lane-dense (tn, 128) store


def _choose_row_tile(N, D, itemsize):
    """Largest row tile that double-buffers two input streams within a
    conservative VMEM budget (safe on v5e/v6e/v7x), multiple of 8 sublanes,
    while keeping >= ~8 grid steps when there is enough work (pipelining /
    v7x megacore)."""
    budget = 24 * 1024 * 1024                       # pipeline-buffer budget (bytes)
    per_row = 2 * 2 * D * itemsize + 2 * 128 * 4    # 2 inputs x 2 bufs + out bufs
    tn = min(budget // per_row, 1024)
    tn = min(tn, _round_up(pl.cdiv(N, 8), 8))
    return int(max(8, (tn // 8) * 8))


def l2_rowsums(pred2d, targ2d):
    """pred2d, targ2d: (N, D) in native dtype -> (N,) f32 per-row SSE."""
    N, D = pred2d.shape
    itemsize = max(jnp.dtype(pred2d.dtype).itemsize, jnp.dtype(targ2d.dtype).itemsize)
    tn = _choose_row_tile(N, D, itemsize)
    n_pad = _round_up(N, tn)
    if n_pad != N:
        pred2d = jnp.pad(pred2d, ((0, n_pad - N), (0, 0)))
        targ2d = jnp.pad(targ2d, ((0, n_pad - N), (0, 0)))

    out = pl.pallas_call(
        _l2_rowsum_kernel,
        out_shape=jax.ShapeDtypeStruct((n_pad, 128), jnp.float32),
        grid_spec=pltpu.PrefetchScalarGridSpec(
            num_scalar_prefetch=0,
            grid=(n_pad // tn,),
            in_specs=[
                pl.BlockSpec((tn, D), lambda i: (i, 0)),
                pl.BlockSpec((tn, D), lambda i: (i, 0)),
            ],
            out_specs=pl.BlockSpec((tn, 128), lambda i: (i, 0)),
        ),
        compiler_params=pltpu.CompilerParams(
            dimension_semantics=("parallel",),
            vmem_limit_bytes=32 * 1024 * 1024,
        ),
    )(pred2d, targ2d)
    return out[:N, 0]


# ----------------------------------------------------------------------------
# RecBase.loss() equivalent
# ----------------------------------------------------------------------------
def rec_base_loss(hp, inputs, model_output, extra_action=True, first_image=True):
    """Mirrors RecBase.loss(). Returns dict of {value, weight, [breakdown]}."""
    loss_gt = inputs["demo_seq"]                    # (B, T, C, H, W)
    loss_pad_mask = inputs["pad_mask"]              # (B, T)
    actions_pad_mask = inputs["pad_mask"][:, :-1]   # (B, T-1)
    loss_actions = model_output["actions"]          # (B, T, A)

    if not first_image:
        loss_gt = loss_gt[:, 1:]
        loss_pad_mask = loss_pad_mask[:, 1:]
    if extra_action:
        loss_actions = loss_actions[:, :-1]         # (B, T-1, A)

    losses = {}

    # ---- dense_img_rec: L2Loss(weight, breakdown=1) ----
    imgs = model_output["images"]                   # (B, T, C, H, W)
    B, T = imgs.shape[:2]
    D = imgs.shape[2] * imgs.shape[3] * imgs.shape[4]
    row_sse = l2_rowsums(imgs.reshape(B * T, D),
                         loss_gt.reshape(B * T, D)).reshape(B, T)
    img_rows = row_sse * loss_pad_mask.astype(jnp.float32)   # mask on tiny (B,T)
    img_value = jnp.sum(img_rows) / (B * T * D)              # error.mean()
    img_breakdown = jnp.sum(img_rows, axis=0) / (B * D)      # mean over dims != 1
    losses["dense_img_rec"] = {
        "value": img_value,
        "weight": hp["dense_img_rec_weight"],
        "breakdown": img_breakdown,
    }

    # ---- dense_action_rec: L2Loss(weight) ----
    # A is ~4 lanes / a few KB: plain jnp (XLA fuses it); Pallas launch would be
    # pure fixed overhead here.
    if hp["regress_actions"]:
        gt_actions = inputs["actions"]              # (B, T-1, A)
        w = actions_pad_mask[..., None].astype(jnp.float32)
        err = (loss_actions.astype(jnp.float32)
               - gt_actions.astype(jnp.float32)) ** 2 * w
        losses["dense_action_rec"] = {
            "value": jnp.mean(err),
            "weight": hp["dense_action_rec_weight"],
        }

    return losses


# TODO(synk): RecBase.forward raises NotImplementedError and _dense_decode
# delegates to an externally-supplied `decoder.decode_seq`; the decoder is not
# defined in this module, so no Pallas kernel is emitted for it.


if __name__ == "__main__":
    # Small deterministic shapes: B=2, T=8, C=4, H=W=16, action dim A=4.
    key = jax.random.PRNGKey(0)
    k1, k2, k3, k4 = jax.random.split(key, 4)
    B, T, C, H, W, A = 2, 8, 4, 16, 16, 4

    inputs = {
        "demo_seq": jax.random.normal(k1, (B, T, C, H, W), dtype=jnp.float32),
        "actions": jax.random.normal(k2, (B, T - 1, A), dtype=jnp.float32),
        # pad_mask: last timestep of second sequence is padding.
        "pad_mask": jnp.ones((B, T), dtype=jnp.float32).at[1, -1].set(0.0),
    }
    model_output = {
        "images": jax.random.normal(k3, (B, T, C, H, W), dtype=jnp.float32),
        "actions": jax.random.normal(k4, (B, T, A), dtype=jnp.float32),
    }
    hp = {
        "dense_img_rec_weight": 1.0,
        "dense_action_rec_weight": 1.0,
        "regress_actions": True,
    }

    losses = rec_base_loss(hp, inputs, model_output)
    jax.block_until_ready(losses)

    # Pure-JAX reference check (same math as torch mse_loss * weights, .mean()).
    def _ref():
        w_img = inputs["pad_mask"][:, :, None, None, None]
        err_img = (model_output["images"] - inputs["demo_seq"]) ** 2 * w_img
        w_act = inputs["pad_mask"][:, :-1, None]
        err_act = (model_output["actions"][:, :-1] - inputs["actions"]) ** 2 * w_act
        return (err_img.mean(), err_img.mean(axis=(0, 2, 3, 4)), err_act.mean())

    ref_img, ref_bd, ref_act = _ref()
    assert jnp.allclose(losses["dense_img_rec"]["value"], ref_img, rtol=1e-5, atol=1e-6)
    assert jnp.allclose(losses["dense_img_rec"]["breakdown"], ref_bd, rtol=1e-5, atol=1e-6)
    assert jnp.allclose(losses["dense_action_rec"]["value"], ref_act, rtol=1e-5, atol=1e-6)

    print("KERNEL_OK")
</pallas_src>

<mosaic_0001>
module attributes {stable_mosaic.version = 11 : i64} {
  func.func @_l2_rowsum_kernel(%arg0: i32, %arg1: memref<8x1024xf32, #tpu.memory_space<vmem>>, %arg2: memref<8x1024xf32, #tpu.memory_space<vmem>>, %arg3: memref<8x128xf32, #tpu.memory_space<vmem>>) attributes {dimension_semantics = [#tpu.dimension_semantics<parallel>], iteration_bounds = array<i64: 2>, scalar_prefetch = 0 : i64, scratch_operands = 0 : i64, tpu.core_type = #tpu.core_type<tc>, window_params = [{transform_indices = @transform_0, window_bounds = array<i64: 8, 1024>}, {transform_indices = @transform_1, window_bounds = array<i64: 8, 1024>}, {transform_indices = @transform_2, window_bounds = array<i64: 8, 128>}]} {
    %c0 = arith.constant 0 : index
    %c0_0 = arith.constant 0 : index
    %0 = vector.load %arg1[%c0, %c0_0] : memref<8x1024xf32, #tpu.memory_space<vmem>>, vector<8x1024xf32>
    %c0_1 = arith.constant 0 : index
    %c0_2 = arith.constant 0 : index
    %1 = vector.load %arg2[%c0_1, %c0_2] : memref<8x1024xf32, #tpu.memory_space<vmem>>, vector<8x1024xf32>
    %2 = arith.subf %0, %1 : vector<8x1024xf32>
    %3 = arith.mulf %2, %2 : vector<8x1024xf32>
    %cst = arith.constant dense<0.000000e+00> : vector<8xf32>
    %4 = vector.multi_reduction <add>, %3, %cst [1] : vector<8x1024xf32> to vector<8xf32>
    %5 = vector.shape_cast %4 : vector<8xf32> to vector<8x1xf32>
    %6 = vector.shape_cast %5 : vector<8x1xf32> to vector<8x1xf32>
    %7 = vector.broadcast %6 : vector<8x1xf32> to vector<8x128xf32>
    %c0_3 = arith.constant 0 : index
    %c0_4 = arith.constant 0 : index
    %8 = vector.load %arg3[%c0_3, %c0_4] : memref<8x128xf32, #tpu.memory_space<vmem>>, vector<8x128xf32>
    tpu.vector_store %arg3[%c0_3, %c0_4], %7 {strides = array<i32>} : memref<8x128xf32, #tpu.memory_space<vmem>>, vector<8x128xf32>,
    return
  }
  func.func @transform_0(%arg0: i32) -> (i32, i32) {
    %c0_i32 = arith.constant 0 : i32
    %c0_i32_0 = arith.constant 0 : i32
    return %arg0, %c0_i32 : i32, i32
  }
  func.func @transform_1(%arg0: i32) -> (i32, i32) {
    %c0_i32 = arith.constant 0 : i32
    %c0_i32_0 = arith.constant 0 : i32
    return %arg0, %c0_i32 : i32, i32
  }
  func.func @transform_2(%arg0: i32) -> (i32, i32) {
    %c0_i32 = arith.constant 0 : i32
    %c0_i32_0 = arith.constant 0 : i32
    return %arg0, %c0_i32 : i32, i32
  }
}

</mosaic_0001>

<bundles_post_ra>
// kernel: tpu_custom_call.1
= control target key start
LH: loop header
LB: loop body
LE: loop exit
PB: predicated region body
PF: predicated region fallthrough
CT: control target
= control target key end

     0   :  { %7 = vsyncpa [#allocation3], 0  ;;  %s772_s0 = inlined_call_operand.hbm [shape: f32[16,1024], index: 0, kind: input, shape index: {}]   ;;  %s773_s1 = inlined_call_operand.hbm [shape: f32[16,1024], index: 1, kind: input, shape index: {}]   ;;  %s774_s2 = inlined_call_operand.hbm [shape: f32[16,128], index: 2, kind: output, shape index: {}]  }
   0x1   :  { %9 = vsyncpa [#allocation3 + $0x1], 0 }
   0x2   :  { %10 = vsyncpa [#allocation6], 0 }
   0x3   :  { %12 = vsyncpa [#allocation6 + $0x1], 0 }
   0x4   :  { %13 = vsyncpa [#allocation4], 0 }
   0x5   :  { %15 = vsyncpa [#allocation4 + $0x1], 0  ;;  %s561_s9 = smov 0   ;;  %s563_s10 = smov 0  }
   0x6   :  { %s565_s11 = smov 0   ;;  %s567_s12 = smov 0  }
   0x7 LB: > { %s582_s13 = sadd.s32 4294967295, %s541_s12   ;;  %s347_s14 = sadd.s32 4294967294, %s541_s12   ;;  %s541_s12 = sphi %s567_s12, %s793_s12   ;;  %s537_s11 = sphi %s565_s11, %s792_s11   ;;  %s533_s10 = sphi %s563_s10, %s791_s10   ;;  %s529_s9 = sphi %s561_s9, %s790_s9  }
   0x8   : > { %s586_s15 = sadd.s32 1, %s541_s12   ;;  %s28_s16 = sadd.s32 1, %s537_s11 }
   0x9   : > { %s25_s17 = ssub.s32 %s541_s12, %s586_s15  ;;  %p35_p0 = scmp.ne.s32.totalorder %s537_s11, %s533_s10 }
   0xa   : > { %p26_p1 = scmp.eq.s32.totalorder %s25_s17, 0  ;;  %p36_p2 = scmp.eq.s32.totalorder %s541_s12, 0 }
   0xb   : > { %p41_p3 = scmp.ne.s32.totalorder %s533_s10, %s529_s9  ;;  %p42_p4 = scmp.eq.s32.totalorder %s582_s13, 0 }
   0xc   : > { %s598_s18 = scalar_select %p26_p1, %s537_s11, %s28_s16  }
   0xd   : > { %p600_p5 = por %p36_p2, %p35_p0  ;;  %p604_p6 = por %p42_p4, %p41_p3 }
   0xe   : > { %p91_p7 = scmp.eq.s32.totalorder %s582_s13, 1  ;;  %p97_p8 = scmp.eq.s32.totalorder %s347_s14, 1 }
   0xf   : > { %s778_s20 = scalar_select %p604_p6, 1, 0 }
  0x10   : > { %p383_p10 = scmp.lt.s32.totalorder %s541_s12, 2  ;;  %p611_p11 = por %p91_p7, %p35_p0 }
  0x11   : > { %p615_p12 = por %p97_p8, %p41_p3  ;;  %s620_s23 = sand.u32 1, %s537_s11  }
  0x12   : > { %s779_s21 = scalar_select %p611_p11, 1, 0 }
  0x13   : > { %s780_s22 = scalar_select %p615_p12, 1, 0 }
  0x14   : > { %s364_s24 = sshll.u32 %s541_s12, 10  ;;  %s350_s25 = sshll.u32 %s620_s23, 6 }
  0x15   : > { %s629_s28 = scalar_lea.hbm %s772_s0, %s364_s24  ;;  %s121_s29 = scalar_lea.vmem [#allocation2], %s350_s25 }
  0x16   : > { %s129_s30 = sshll.u32 %s121_s29, 4  ;;  %p635_p13 = pnand %p383_p10, %p600_p5  ;;  %s639_s30 = int_to_ptr.vmem [resolvable:$true] %s129_s30 }
  0x17   : > { %s118_s4 = scalar_lea.sflag [#allocation3], %s620_s23  ;;  %s417_s5 = scalar_lea.hbm %s629_s28, 1024 }
  0x18   : > { %p418_p2 = scmp.ne.s32.totalorder %s629_s28, %s417_s5  ;;  %p419_p3 = pneg %p635_p13 }
  0x19   : > { %s422_s8 = scalar_lea.hbm %s772_s0, 2048  ;;  %p423_p5 = scmp.lt.s32.totalorder %s629_s28, %s772_s0 }
  0x1a   : > { %p420_p4 = pnand %p419_p3, %p418_p2  ;;  %p424_p8 = scmp.lt.s32.totalorder %s422_s8, %s417_s5 }
  0x1c   : > { %p421_p7 = pneg %p420_p4  ;;  %p425_p10 = por %p424_p8, %p423_p5 }
  0x1e   : > { %p426_p9 = pnand %p425_p10, %p421_p7 }
  0x20   : > { %429 = shalt.err (!%p426_p9)
}
  0x21   : > { %s430_s17 = scalar_lea.vmem %s639_s30, 1024  ;;  %s543_s19 = smov [#allocation2]  }
  0x22   : > { %p431_p0 = scmp.ne.s32.totalorder %s639_s30, %s430_s17  ;;  %s435_s26 = sshll.u32 %s543_s19, 4  ;;  %s436_s26 = int_to_ptr.vmem [resolvable:$false] %s435_s26 }
  0x23   : > { %s437_s27 = scalar_lea.vmem %s436_s26, 2048  ;;  %p438_p1 = scmp.lt.s32.totalorder %s639_s30, %s436_s26 }
  0x24   : > { %p433_p2 = pnand %p431_p0, %p419_p3  ;;  %p439_p12 = scmp.lt.s32.totalorder %s437_s27, %s430_s17 }
  0x26   : > { %p434_p4 = pneg %p433_p2  ;;  %p440_p11 = por %p439_p12, %p438_p1 }
  0x28   : > { %p441_p5 = pnand %p440_p11, %p434_p4 }
  0x2a   : > { %444 = shalt.err (!%p441_p5)
}
  0x2b   : > { %375 = dma.hbm_to_vmem [thread:$0]  (!%p635_p13), %s629_s28, 1024, %s639_s30, %s118_s4  }
  0x2c   : > { %p782_p9 = scmp.lt.s32.totalorder %s541_s12, 3  ;;  %p783_p0 = scmp.ge.s32.totalorder %s541_s12, 1 }
  0x2d   : > { %s681_s7 = scalar_lea.hbm %s773_s1, %s364_s24  ;;  %s140_s8 = scalar_lea.vmem [#allocation5], %s350_s25 }
  0x2e   : > { %p672_p7 = pnand %p783_p0, %p782_p9  ;;  %s148_s14 = sshll.u32 %s140_s8, 4  ;;  %s149_s14 = int_to_ptr.vmem [resolvable:$true] %s148_s14 }
  0x2f   : > { %s137_s28 = scalar_lea.sflag [#allocation6], %s620_s23  ;;  %s445_s30 = scalar_lea.hbm %s681_s7, 1024 }
  0x30   : > { %s784_s29 = scalar_select %p672_p7, 1, 0 }
  0x31   : > { %p446_p11 = scmp.ne.s32.totalorder %s681_s7, %s445_s30  ;;  %s450_s17 = scalar_lea.hbm %s773_s1, 2048 }
  0x32   : > { %p451_p8 = scmp.lt.s32.totalorder %s681_s7, %s773_s1  ;;  %p452_p10 = scmp.lt.s32.totalorder %s450_s17, %s445_s30 }
  0x33   : > { %p448_p12 = pnand %p446_p11, %p419_p3 }
  0x34   : > { %p453_p2 = por %p452_p10, %p451_p8 }
  0x35   : > { %p449_p1 = pneg %p448_p12 }
  0x37   : > { %p454_p4 = pnand %p453_p2, %p449_p1 }
  0x39   : > { %457 = shalt.err (!%p454_p4)
}
  0x3a   : > { %s458_s25 = scalar_lea.vmem %s149_s14, 1024  ;;  %s544_s23 = smov [#allocation5]  }
  0x3b   : > { %p459_p5 = scmp.ne.s32.totalorder %s149_s14, %s458_s25  ;;  %s463_s26 = sshll.u32 %s544_s23, 4  ;;  %s464_s26 = int_to_ptr.vmem [resolvable:$false] %s463_s26 }
  0x3c   : > { %s465_s27 = scalar_lea.vmem %s464_s26, 2048  ;;  %p466_p11 = scmp.lt.s32.totalorder %s149_s14, %s464_s26 }
  0x3d   : > { %p461_p9 = pnand %p459_p5, %p419_p3  ;;  %p467_p12 = scmp.lt.s32.totalorder %s465_s27, %s458_s25 }
  0x3f   : > { %p462_p0 = pneg %p461_p9  ;;  %p468_p6 = por %p467_p12, %p466_p11 }
  0x41   : > { %p469_p7 = pnand %p468_p6, %p462_p0 }
  0x43   : > { %472 = shalt.err (!%p469_p7)
}
  0x44   : > { %378 = dma.hbm_to_vmem [thread:$0]  (!%p635_p13), %s681_s7, 1024, %s149_s14, %s137_s28  }
  0x45   : > { %p785_p1 = scmp.ne.s32.totalorder %s784_s29, 0 }
  0x46   : > { %s707_s5 = sand.u32 (!%p785_p1), 1, %s533_s10   ;;  %p786_p3 = scmp.ne.s32.totalorder (!%p785_p1), %s778_s20, 0 }
  0x47   : > { %157 = sbr.rel (%p785_p1) target bundleno = 251 (0xfb), region = 28  ;;  %s357_s6 = sshll.u32 (!%p785_p1), %s707_s5, 6 }
  0x48   : > { %s160_s8 = scalar_lea.sflag (!%p785_p1), [#allocation3], %s707_s5  ;;  %s711_s30 = scalar_lea.vmem (!%p785_p1), [#allocation2], %s357_s6 }
  0x4c   : > { %516 = dma.done.wait (%p786_p3), %s160_s8, 1024  }
  0x4d   : > { %518 = vsyncadd (%p786_p3), %s160_s8, 4294966272  ;;  %s169_s3 = scalar_lea.sflag [#allocation6], %s707_s5  ;;  %s172_s29 = scalar_lea.vmem [#allocation5], %s357_s6 }
  0x4e   : > { %520 = dma.done.wait (%p786_p3), %s169_s3, 1024  }
  0x4f   : > { %522 = vsyncadd (%p786_p3), %s169_s3, 4294966272  ;;  %v198_v0 = vld [vmem:[%s711_s30] sm:$0xff]  ;;  %v199_v1 = vld [vmem:[%s711_s30 + $0x8] sm:$0xff]  ;;  %s359_s20 = sshll.u32 %s707_s5, 3  ;;  %s361_s28 = sshll.u32 %s582_s13, 7 }
  0x50   : > { %v200_v2 = vld [vmem:[%s711_s30 + $0x10] sm:$0xff]  ;;  %v201_v3 = vld [vmem:[%s711_s30 + $0x18] sm:$0xff]  ;;  %v202_v4 = vld [vmem:[%s711_s30 + $0x20] sm:$0xff]  ;;  %s197_s7 = scalar_lea.vmem [#allocation7], %s359_s20  ;;  %s252_s17 = scalar_lea.hbm %s774_s2, %s361_s28 }
  0x51   : > { %v206_v5 = vld [vmem:[%s172_s29] sm:$0xff]  ;;  %v207_v6 = vld [vmem:[%s172_s29 + $0x8] sm:$0xff]  ;;  %v208_v7 = vld [vmem:[%s172_s29 + $0x10] sm:$0xff]  ;;  %s254_s14 = sshll.u32 %s197_s7, 4  ;;  %s241_s24 = scalar_lea.sflag [#allocation4], %s707_s5  ;;  %s732_s14 = int_to_ptr.vmem [resolvable:$true] %s254_s14 }
  0x52   : > { %v209_v8 = vld [vmem:[%s172_s29 + $0x18] sm:$0xff]  ;;  %v214_v9 = vsub.f32 %v198_v0, %v206_v5  ;;  %v210_v10 = vld [vmem:[%s172_s29 + $0x20] sm:$0xff]  ;;  %v215_v11 = vsub.f32 %v199_v1, %v207_v6  ;;  %v216_v12 = vsub.f32 %v200_v2, %v208_v7  ;;  %v203_v14 = vld [vmem:[%s711_s30 + $0x28] sm:$0xff]  ;;  %s473_s19 = scalar_lea.vmem %s732_s14, 128  ;;  %p787_p13 = scmp.ne.s32.totalorder %s779_s21, 0 }
  0x53   : > { %v217_v13 = vsub.f32 %v201_v3, %v209_v8  ;;  %v211_v15 = vld [vmem:[%s172_s29 + $0x28] sm:$0xff]  ;;  %v218_v17 = vsub.f32 %v202_v4, %v210_v10  ;;  %v204_v20 = vld [vmem:[%s711_s30 + $0x30] sm:$0xff]  ;;  %v205_v25 = vld [vmem:[%s711_s30 + $0x38] sm:$0xff]  ;;  %p474_p6 = scmp.ne.s32.totalorder %s732_s14, %s473_s19  ;;  %s545_s25 = smov [#allocation7]  }
  0x54   : > { %v222_v16 = vmul.f32 %v214_v9, %v214_v9  ;;  %v223_v18 = vmul.f32 %v215_v11, %v215_v11  ;;  %v224_v19 = vmul.f32 %v216_v12, %v216_v12  ;;  %v212_v21 = vld [vmem:[%s172_s29 + $0x30] sm:$0xff]  ;;  %v219_v22 = vsub.f32 %v203_v14, %v211_v15  ;;  %v213_v26 = vld [vmem:[%s172_s29 + $0x38] sm:$0xff]  ;;  %s477_s23 = sshll.u32 %s545_s25, 4  ;;  %s478_s23 = int_to_ptr.vmem [resolvable:$false] %s477_s23 }
  0x55   : > { %v225_v23 = vmul.f32 %v217_v13, %v217_v13  ;;  %v220_v27 = vsub.f32 %v204_v20, %v212_v21  ;;  %v226_v28 = vmul.f32 %v218_v17, %v218_v17  ;;  %v221_v30 = vsub.f32 %v205_v25, %v213_v26  ;;  %p475_p7 = pnand %p474_p6, %p787_p13  ;;  %s479_s13 = scalar_lea.vmem %s478_s23, 256 }
  0x56   : > { %v230_v24 = vadd.f32 %v223_v18, %v222_v16  ;;  %v227_v31 = vmul.f32 %v219_v22, %v219_v22  ;;  %p480_p10 = scmp.lt.s32.totalorder %s732_s14, %s478_s23  ;;  %p481_p2 = scmp.lt.s32.totalorder %s479_s13, %s473_s19 }
  0x57   : > { %v228_v33 = vmul.f32 %v220_v27, %v220_v27  ;;  %v229_v35 = vmul.f32 %v221_v30, %v221_v30  ;;  %p476_p8 = pneg %p475_p7 }
  0x58   : > { %v231_v29 = vadd.f32 %v230_v24, %v224_v19  ;;  %p482_p4 = por %p481_p2, %p480_p10 }
  0x5a   : > { %v232_v32 = vadd.f32 %v231_v29, %v225_v23  ;;  %p483_p5 = pnand %p482_p4, %p476_p8 }
  0x5c   : > { %v233_v34 = vadd.f32 %v232_v32, %v226_v28 }
  0x5e   : > { %v234_v36 = vadd.f32 %v233_v34, %v227_v31 }
  0x60   : > { %v235_v37 = vadd.f32 %v234_v36, %v228_v33 }
  0x62   : > { %v236_v38 = vadd.f32 %v235_v37, %v229_v35 }
  0x64   : > { %237 = vadd.xlane.f32.xlu0 %v236_v38 }
  0xed   : > { %v238_v39 = vpop.xlane.xlu0 %237 }
  0xee   : > { %239 = vst [vmem:[%s197_s7] sm:$0xff] %v238_v39 }
  0xef   : > { %486 = shalt.err (!%p483_p5)
}
  0xf0   : > { %s487_s26 = scalar_lea.hbm %s252_s17, 128  ;;  %s491_s6 = scalar_lea.hbm %s774_s2, 256 }
  0xf1   : > { %p488_p9 = scmp.ne.s32.totalorder %s252_s17, %s487_s26  ;;  %p492_p12 = scmp.lt.s32.totalorder %s252_s17, %s774_s2 }
  0xf2   : > { %p493_p1 = scmp.lt.s32.totalorder %s491_s6, %s487_s26 }
  0xf3   : > { %p489_p0 = pnand %p488_p9, %p787_p13 }
  0xf4   : > { %p494_p3 = por %p493_p1, %p492_p12 }
  0xf5   : > { %p490_p11 = pneg %p489_p0 }
  0xf7   : > { %p495_p6 = pnand %p494_p3, %p490_p11 }
  0xf9   : > { %498 = shalt.err (!%p495_p6)
}
  0xfa   : > { %370 = dma.vmem_to_hbm [thread:$0]  (%p787_p13), %s732_s14, 128, %s252_s17, %s241_s24  }
  0xfb PF: > { %s266_s3 = sand.u32 1, %s529_s9   ;;  %p788_p7 = scmp.ne.s32.totalorder %s780_s22, 0 }
  0xfc   : > { %p789_p8 = scmp.ge.s32.totalorder %s541_s12, 2  ;;  %s267_s29 = scalar_lea.sflag [#allocation4], %s266_s3 }
  0xfe   : > { %p380_p10 = pnand %p789_p8, %p788_p7 }
 0x100   : > { %p381_p2 = pneg %p380_p10 }
 0x102   : > { %524 = dma.done.wait (%p381_p2), %s267_s29, 128  }
 0x103   : > { %526 = vsyncadd (%p381_p2), %s267_s29, 4294967168  ;;  %p18_p4 = scmp.ge.s32.totalorder %s586_s15, 4   ;;  %s790_s9 = smov %s533_s10 }
 0x104   : > { %s791_s10 = smov %s537_s11  ;;  %s792_s11 = smov %s598_s18 }
 0x105   : > { %s793_s12 = smov %s586_s15  ;;  %20 = sbr.rel (!%p18_p4) target bundleno = 7 (0x7), region = 86 }
 0x10a   :  { %272 = vsyncpa [#allocation3], 1 }
 0x10b   :  { %274 = vsyncpa [#allocation3 + $0x1], 1 }
 0x10c   :  { %275 = vsyncpa [#allocation6], 1 }
 0x10d   :  { %277 = vsyncpa [#allocation6 + $0x1], 1 }
 0x10e   :  { %278 = vsyncpa [#allocation4], 1 }
 0x10f   :  { %280 = vsyncpa [#allocation4 + $0x1], 1 }

</bundles_post_ra>
